<compile_context>
chip_gen: v6e
topology: v6e:2x2x1
jax: 0.10.0
libtpu: 0.0.40
codegen_flags: <defaults>
</compile_context>

<pallas_src>
import jax
import jax.numpy as jnp
import numpy as np
from jax import lax
from jax.experimental import pallas as pl
from jax.experimental.pallas import tpu as pltpu

BN_EPS = 1e-5


# ----------------------------------------------------------------------------
# Init-time operator construction (host-side numpy; "weight repacking")
# ----------------------------------------------------------------------------
def _conv3x3_operator(w_oihw, h_in, w_in, stride):
  """Dense operator M s.t. x_flat @ M == Conv2d(k=3, stride, pad=1, no bias).

  x_flat is the NCHW row-major flatten of one sample: index (ci*H + h)*W + w.
  Output flatten: (co*Ho + i)*Wo + j.  Zero padding == rows simply absent.
  """
  w_np = np.asarray(w_oihw, np.float32)
  c_out, c_in, _, _ = w_np.shape
  h_out = (h_in - 1) // stride + 1
  w_out = (w_in - 1) // stride + 1
  op = np.zeros((c_in * h_in * w_in, c_out * h_out * w_out), np.float32)
  for co in range(c_out):
    for i in range(h_out):
      for j in range(w_out):
        o_idx = (co * h_out + i) * w_out + j
        for ky in range(3):
          h = stride * i + ky - 1
          if not 0 <= h < h_in:
            continue
          for kx in range(3):
            w_pos = stride * j + kx - 1
            if not 0 <= w_pos < w_in:
              continue
            for ci in range(c_in):
              op[(ci * h_in + h) * w_in + w_pos, o_idx] += w_np[co, ci, ky, kx]
  return op


def _avgpool_operator(c, h_in, w_in):
  """AvgPool2d(kernel=3, stride=2, padding=1, count_include_pad=True) as matmul."""
  h_out = (h_in - 1) // 2 + 1
  w_out = (w_in - 1) // 2 + 1
  op = np.zeros((c * h_in * w_in, c * h_out * w_out), np.float32)
  for ch in range(c):
    for i in range(h_out):
      for j in range(w_out):
        o_idx = (ch * h_out + i) * w_out + j
        for ky in range(3):
          h = 2 * i + ky - 1
          if not 0 <= h < h_in:
            continue
          for kx in range(3):
            w_pos = 2 * j + kx - 1
            if not 0 <= w_pos < w_in:
              continue
            op[(ch * h_in + h) * w_in + w_pos, o_idx] = 1.0 / 9.0
  return op


def _bn_flat(scale_c, shift_c, h, w):
  """Per-channel BN(eval) scale/shift -> per-position vectors (NCHW flatten)."""
  s = np.repeat(np.asarray(scale_c, np.float32).reshape(-1), h * w)
  b = np.repeat(np.asarray(shift_c, np.float32).reshape(-1), h * w)
  return s, b


def prepare_operators(params, out_channels, spatial):
  """Repack all weights into per-layer dense operators (called once at init).

  Init-time algebra (per performance review):
    * conv12      = conv1_op @ conv2_op            (no BN/ReLU between them)
    * res*_wpool  = last_resblock_conv_op @ pool_op (AvgPool folded into blk 3)
    * matmul operators cast to bfloat16; BN affine vectors stay float32.
  """
  h0 = spatial                          # input spatial
  h1 = (h0 - 1) // 2 + 1                # after conv1 (stride 2)
  h2 = (h1 - 1) // 2 + 1                # after conv2 (stride 2)
  h3 = (h2 - 1) // 2 + 1                # after avgpool 1

  f64 = np.float64
  conv1 = _conv3x3_operator(params["conv1_w"], h0, h0, 2).astype(f64)
  conv2 = _conv3x3_operator(params["conv2_w"], h1, h1, 2).astype(f64)
  conv12 = (conv1 @ conv2).astype(np.float32)          # (Cin*h0^2, Cout*h2^2)

  pool1 = _avgpool_operator(out_channels, h2, h2)       # (Cout*h2^2, Cout*h3^2)
  pool2 = _avgpool_operator(out_channels, h3, h3)       # (Cout*h3^2, Cout)

  def stage(blocks, hh, pool_op):
    ws = [_conv3x3_operator(blk["w"], hh, hh, 1) for blk in blocks]
    sb = [_bn_flat(blk["scale"], blk["shift"], hh, hh) for blk in blocks]
    w_first = np.stack(ws[:2])                                       # (2, D, D)
    w_pool = (ws[2].astype(f64) @ pool_op.astype(f64)).astype(np.float32)
    scale = np.stack([s for s, _ in sb])[:, None, :]                 # (3, 1, D)
    shift = np.stack([b for _, b in sb])[:, None, :]                 # (3, 1, D)
    return w_first, w_pool, scale, shift

  r2w, r2wp, r2s, r2b = stage(params["res2"], h2, pool1)
  r3w, r3wp, r3s, r3b = stage(params["res3"], h3, pool2)

  matmul_ops = {
      "conv12": conv12,
      "res2_w": r2w, "res2_wpool": r2wp, "pool1": pool1,
      "res3_w": r3w, "res3_wpool": r3wp, "pool2": pool2,
  }
  affine_ops = {
      "res2_scale": r2s, "res2_shift": r2b,
      "res3_scale": r3s, "res3_shift": r3b,
  }
  ops = {k: jnp.asarray(v, jnp.bfloat16) for k, v in matmul_ops.items()}
  ops.update({k: jnp.asarray(v, jnp.float32) for k, v in affine_ops.items()})
  return ops


# ----------------------------------------------------------------------------
# The single fused Pallas kernel
# ----------------------------------------------------------------------------
def _repnet_kernel(x_ref, c12_ref,
                   r2w_ref, r2s_ref, r2b_ref, r2wp_ref, p1_ref,
                   r3w_ref, r3s_ref, r3b_ref, r3wp_ref, p2_ref,
                   o_ref):
  """One batch-block of rows through the whole network; all VMEM-resident."""

  def mm(a, b):
    # MXU-native bf16 operands, f32 accumulation.
    return jnp.dot(a.astype(jnp.bfloat16), b, preferred_element_type=jnp.float32)

  # conv1 -> conv2 (both 3x3, stride 2, pad 1) folded into one operator.
  x = mm(x_ref[...], c12_ref[...])

  # Stage 2: ResBlock x2, then (ResBlock 3 + AvgPool) folded:
  #   pool(x + conv(relu(bn(x)))) == x @ P1 + relu(bn(x)) @ (W3 @ P1)
  for k in range(2):
    y = jnp.maximum(x * r2s_ref[k] + r2b_ref[k], 0.0)
    x = x + mm(y, r2w_ref[k])
  y = jnp.maximum(x * r2s_ref[2] + r2b_ref[2], 0.0)
  x = mm(x, p1_ref[...]) + mm(y, r2wp_ref[...])

  # Stage 3: same structure at the pooled resolution.
  for k in range(2):
    y = jnp.maximum(x * r3s_ref[k] + r3b_ref[k], 0.0)
    x = x + mm(y, r3w_ref[k])
  y = jnp.maximum(x * r3s_ref[2] + r3b_ref[2], 0.0)
  x = mm(x, p2_ref[...]) + mm(y, r3wp_ref[...])

  o_ref[...] = x.astype(o_ref.dtype)


def _round_up(x, m):
  return (x + m - 1) // m * m


def _fused_forward_flat(x_flat, ops, tm):
  n_pad, d_in = x_flat.shape
  d_out = ops["pool2"].shape[1]

  weights = (ops["conv12"],
             ops["res2_w"], ops["res2_scale"], ops["res2_shift"],
             ops["res2_wpool"], ops["pool1"],
             ops["res3_w"], ops["res3_scale"], ops["res3_shift"],
             ops["res3_wpool"], ops["pool2"])

  def act_spec(d):
    return pl.BlockSpec((tm, d), lambda i: (i, 0))

  def const_spec(shape):
    zeros = (0,) * len(shape)
    return pl.BlockSpec(tuple(shape), lambda i, z=zeros: z)

  # Advisory cost for XLA's scheduler around this custom call.
  mm_kn = [ops["conv12"].shape,
           ops["res2_w"].shape[1:], ops["res2_w"].shape[1:],
           ops["pool1"].shape, ops["res2_wpool"].shape,
           ops["res3_w"].shape[1:], ops["res3_w"].shape[1:],
           ops["pool2"].shape, ops["res3_wpool"].shape]
  flops = int(n_pad) * sum(2 * int(k) * int(c) for k, c in mm_kn)
  bytes_accessed = int(
      x_flat.size * x_flat.dtype.itemsize
      + sum(int(w.size) * int(w.dtype.itemsize) for w in weights)
      + n_pad * int(d_out) * 4)

  return pl.pallas_call(
      _repnet_kernel,
      out_shape=jax.ShapeDtypeStruct((n_pad, d_out), jnp.float32),
      grid=(n_pad // tm,),
      in_specs=[act_spec(d_in)] + [const_spec(w.shape) for w in weights],
      out_specs=act_spec(d_out),
      compiler_params=pltpu.CompilerParams(
          dimension_semantics=("parallel",),          # batch sharding on v7x
          vmem_limit_bytes=32 * 1024 * 1024),
      cost_estimate=pl.CostEstimate(
          flops=flops, transcendentals=0, bytes_accessed=bytes_accessed),
  )(x_flat, *weights)


def representation_forward(x_nchw, ops):
  n = x_nchw.shape[0]
  d_out = ops["pool2"].shape[1]                        # = out_channels * 1 * 1
  x_flat = x_nchw.reshape(n, -1).astype(jnp.float32)   # NCHW row-major flatten
  # Batch rows are the grid / MXU M dimension; pad to a sublane multiple.
  tm = min(128, _round_up(n, 8))
  n_pad = _round_up(n, tm)
  if n_pad != n:
    x_flat = jnp.pad(x_flat, ((0, n_pad - n), (0, 0)))
  out_flat = _fused_forward_flat(x_flat, ops, tm)
  return out_flat[:n].reshape(n, d_out, 1, 1)          # final spatial is 1x1


# ----------------------------------------------------------------------------
# Deterministic parameter init (mirrors the module's __init__)
# ----------------------------------------------------------------------------
def init_params(key, in_channels, out_channels):
  def kaiming(k, c_out, c_in):          # kaiming_normal_, mode='fan_out', relu
    std = (2.0 / (c_out * 9)) ** 0.5
    return std * jax.random.normal(k, (c_out, c_in, 3, 3), jnp.float32)

  def bn_affine(c):                     # gamma=1, beta=0, running mean=0, var=1
    gamma = jnp.ones((c,), jnp.float32)
    beta = jnp.zeros((c,), jnp.float32)
    mean = jnp.zeros((c,), jnp.float32)
    var = jnp.ones((c,), jnp.float32)
    scale = gamma / jnp.sqrt(var + BN_EPS)
    shift = beta - mean * scale
    return scale.reshape(1, c), shift.reshape(1, c)

  keys = jax.random.split(key, 8)
  params = {
      "conv1_w": kaiming(keys[0], in_channels, in_channels),
      "conv2_w": kaiming(keys[1], out_channels, in_channels),
      "res2": [],
      "res3": [],
  }
  for i in range(3):
    s, b = bn_affine(out_channels)
    params["res2"].append({"w": kaiming(keys[2 + i], out_channels, out_channels),
                           "scale": s, "shift": b})
  for i in range(3):
    s, b = bn_affine(out_channels)
    params["res3"].append({"w": kaiming(keys[5 + i], out_channels, out_channels),
                           "scale": s, "shift": b})
  return params


# ----------------------------------------------------------------------------
# Pure-JAX reference (for correctness check)
# ----------------------------------------------------------------------------
def reference_forward(x, params):
  def conv(x, w, stride):
    return lax.conv_general_dilated(
        x, w, (stride, stride), ((1, 1), (1, 1)),
        dimension_numbers=("NCHW", "OIHW", "NCHW"),
        precision=lax.Precision.HIGHEST)

  def resblock_ref(x, blk):
    y = x * blk["scale"].reshape(1, -1, 1, 1) + blk["shift"].reshape(1, -1, 1, 1)
    y = jnp.maximum(y, 0.0)
    return x + conv(y, blk["w"], 1)

  def avgpool_ref(x):
    s = lax.reduce_window(x, 0.0, lax.add, (1, 1, 3, 3), (1, 1, 2, 2),
                          ((0, 0), (0, 0), (1, 1), (1, 1)))
    return s / 9.0

  x = conv(x, params["conv1_w"], 2)
  x = conv(x, params["conv2_w"], 2)
  for blk in params["res2"]:
    x = resblock_ref(x, blk)
  x = avgpool_ref(x)
  for blk in params["res3"]:
    x = resblock_ref(x, blk)
  x = avgpool_ref(x)
  return x


if __name__ == "__main__":
  key = jax.random.PRNGKey(0)
  k_x, k_p = jax.random.split(key)

  # Small MuZero-Atari-like toy shapes.  batch=8 (one full f32 sublane tile)
  # instead of 2 so the MXU M dimension / vreg sublanes are not mostly empty.
  n, c_in, hw = 8, 4, 16
  c_out = 2 * c_in                      # out_channels = in_channels * 2
  x = jax.random.normal(k_x, (n, c_in, hw, hw), jnp.float32)
  params = init_params(k_p, c_in, c_out)
  ops = prepare_operators(params, c_out, hw)     # one-time weight repacking

  fwd = jax.jit(representation_forward)
  out = jax.block_until_ready(fwd(x, ops))
  assert out.shape == (n, c_out, 1, 1), out.shape

  ref = reference_forward(x, params)
  err = float(jnp.max(jnp.abs(out - ref)))
  ref_scale = float(jnp.max(jnp.abs(ref)))
  # bf16 matmul operands (f32 accumulation): allow 2% of the output's range.
  if not err <= 2e-2 * max(ref_scale, 1.0):
    raise AssertionError(
        f"Pallas output mismatch vs reference: max|err|={err}, max|ref|={ref_scale}")

  print("KERNEL_OK")
</pallas_src>

<mosaic_0001>
module attributes {stable_mosaic.version = 11 : i64} {
  func.func @_repnet_kernel(%arg0: i32, %arg1: memref<8x1024xf32, #tpu.memory_space<vmem>>, %arg2: memref<1024x128xbf16, #tpu.memory_space<vmem>>, %arg3: memref<2x128x128xbf16, #tpu.memory_space<vmem>>, %arg4: memref<3x1x128xf32, #tpu.memory_space<vmem>>, %arg5: memref<3x1x128xf32, #tpu.memory_space<vmem>>, %arg6: memref<128x32xbf16, #tpu.memory_space<vmem>>, %arg7: memref<128x32xbf16, #tpu.memory_space<vmem>>, %arg8: memref<2x32x32xbf16, #tpu.memory_space<vmem>>, %arg9: memref<3x1x32xf32, #tpu.memory_space<vmem>>, %arg10: memref<3x1x32xf32, #tpu.memory_space<vmem>>, %arg11: memref<32x8xbf16, #tpu.memory_space<vmem>>, %arg12: memref<32x8xbf16, #tpu.memory_space<vmem>>, %arg13: memref<8x8xf32, #tpu.memory_space<vmem>>) attributes {dimension_semantics = [#tpu.dimension_semantics<parallel>], iteration_bounds = array<i64: 1>, scalar_prefetch = 0 : i64, scratch_operands = 0 : i64, tpu.core_type = #tpu.core_type<tc>, window_params = [{transform_indices = @transform_0, window_bounds = array<i64: 8, 1024>}, {pipeline_mode = #tpu.pipeline_mode<synchronous>, transform_indices = @transform_1, window_bounds = array<i64: 1024, 128>}, {pipeline_mode = #tpu.pipeline_mode<synchronous>, transform_indices = @transform_2, window_bounds = array<i64: 2, 128, 128>}, {pipeline_mode = #tpu.pipeline_mode<synchronous>, transform_indices = @transform_3, window_bounds = array<i64: 3, 1, 128>}, {pipeline_mode = #tpu.pipeline_mode<synchronous>, transform_indices = @transform_4, window_bounds = array<i64: 3, 1, 128>}, {pipeline_mode = #tpu.pipeline_mode<synchronous>, transform_indices = @transform_5, window_bounds = array<i64: 128, 32>}, {pipeline_mode = #tpu.pipeline_mode<synchronous>, transform_indices = @transform_6, window_bounds = array<i64: 128, 32>}, {pipeline_mode = #tpu.pipeline_mode<synchronous>, transform_indices = @transform_7, window_bounds = array<i64: 2, 32, 32>}, {pipeline_mode = #tpu.pipeline_mode<synchronous>, transform_indices = @transform_8, window_bounds = array<i64: 3, 1, 32>}, {pipeline_mode = #tpu.pipeline_mode<synchronous>, transform_indices = @transform_9, window_bounds = array<i64: 3, 1, 32>}, {pipeline_mode = #tpu.pipeline_mode<synchronous>, transform_indices = @transform_10, window_bounds = array<i64: 32, 8>}, {pipeline_mode = #tpu.pipeline_mode<synchronous>, transform_indices = @transform_11, window_bounds = array<i64: 32, 8>}, {transform_indices = @transform_12, window_bounds = array<i64: 8, 8>}]} {
    %c0 = arith.constant 0 : index
    %c0_0 = arith.constant 0 : index
    %0 = vector.load %arg1[%c0, %c0_0] : memref<8x1024xf32, #tpu.memory_space<vmem>>, vector<8x1024xf32>
    %c0_1 = arith.constant 0 : index
    %c0_2 = arith.constant 0 : index
    %1 = vector.load %arg2[%c0_1, %c0_2] : memref<1024x128xbf16, #tpu.memory_space<vmem>>, vector<1024x128xbf16>
    %2 = arith.truncf %0 : vector<8x1024xf32> to vector<8x1024xbf16>
    %cst = arith.constant dense<0.000000e+00> : vector<8x128xf32>
    %3 = tpu.matmul %2, %1, %cst {dimension_numbers = #tpu.dot_dimension_numbers<[1], [0], [0], [1], [0, 0, 1, 1], [], []>} : vector<8x1024xbf16>, vector<1024x128xbf16>, vector<8x128xf32> -> vector<8x128xf32>
    %c0_3 = arith.constant 0 : index
    %c0_4 = arith.constant 0 : index
    %c0_5 = arith.constant 0 : index
    %4 = vector.load %arg4[%c0_3, %c0_4, %c0_5] : memref<3x1x128xf32, #tpu.memory_space<vmem>>, vector<1x1x128xf32>
    %5 = vector.shape_cast %4 : vector<1x1x128xf32> to vector<1x128xf32>
    %6 = vector.broadcast %5 : vector<1x128xf32> to vector<8x128xf32>
    %7 = arith.mulf %3, %6 : vector<8x128xf32>
    %c0_6 = arith.constant 0 : index
    %c0_7 = arith.constant 0 : index
    %c0_8 = arith.constant 0 : index
    %8 = vector.load %arg5[%c0_6, %c0_7, %c0_8] : memref<3x1x128xf32, #tpu.memory_space<vmem>>, vector<1x1x128xf32>
    %9 = vector.shape_cast %8 : vector<1x1x128xf32> to vector<1x128xf32>
    %10 = vector.broadcast %9 : vector<1x128xf32> to vector<8x128xf32>
    %11 = arith.addf %7, %10 : vector<8x128xf32>
    %cst_9 = arith.constant 0.000000e+00 : f32
    %12 = vector.broadcast %cst_9 : f32 to vector<8x128xf32>
    %13 = arith.maximumf %11, %12 : vector<8x128xf32>
    %c0_10 = arith.constant 0 : index
    %c0_11 = arith.constant 0 : index
    %c0_12 = arith.constant 0 : index
    %14 = vector.load %arg3[%c0_10, %c0_11, %c0_12] : memref<2x128x128xbf16, #tpu.memory_space<vmem>>, vector<1x128x128xbf16>
    %15 = vector.shape_cast %14 : vector<1x128x128xbf16> to vector<128x128xbf16>
    %16 = arith.truncf %13 : vector<8x128xf32> to vector<8x128xbf16>
    %cst_13 = arith.constant dense<0.000000e+00> : vector<8x128xf32>
    %17 = tpu.matmul %16, %15, %cst_13 {dimension_numbers = #tpu.dot_dimension_numbers<[1], [0], [0], [1], [0, 0, 1, 1], [], []>} : vector<8x128xbf16>, vector<128x128xbf16>, vector<8x128xf32> -> vector<8x128xf32>
    %18 = arith.addf %3, %17 : vector<8x128xf32>
    %c1 = arith.constant 1 : index
    %c0_14 = arith.constant 0 : index
    %c0_15 = arith.constant 0 : index
    %19 = vector.load %arg4[%c1, %c0_14, %c0_15] : memref<3x1x128xf32, #tpu.memory_space<vmem>>, vector<1x1x128xf32>
    %20 = vector.shape_cast %19 : vector<1x1x128xf32> to vector<1x128xf32>
    %21 = vector.broadcast %20 : vector<1x128xf32> to vector<8x128xf32>
    %22 = arith.mulf %18, %21 : vector<8x128xf32>
    %c1_16 = arith.constant 1 : index
    %c0_17 = arith.constant 0 : index
    %c0_18 = arith.constant 0 : index
    %23 = vector.load %arg5[%c1_16, %c0_17, %c0_18] : memref<3x1x128xf32, #tpu.memory_space<vmem>>, vector<1x1x128xf32>
    %24 = vector.shape_cast %23 : vector<1x1x128xf32> to vector<1x128xf32>
    %25 = vector.broadcast %24 : vector<1x128xf32> to vector<8x128xf32>
    %26 = arith.addf %22, %25 : vector<8x128xf32>
    %cst_19 = arith.constant 0.000000e+00 : f32
    %27 = vector.broadcast %cst_19 : f32 to vector<8x128xf32>
    %28 = arith.maximumf %26, %27 : vector<8x128xf32>
    %c1_20 = arith.constant 1 : index
    %c0_21 = arith.constant 0 : index
    %c0_22 = arith.constant 0 : index
    %29 = vector.load %arg3[%c1_20, %c0_21, %c0_22] : memref<2x128x128xbf16, #tpu.memory_space<vmem>>, vector<1x128x128xbf16>
    %30 = vector.shape_cast %29 : vector<1x128x128xbf16> to vector<128x128xbf16>
    %31 = arith.truncf %28 : vector<8x128xf32> to vector<8x128xbf16>
    %cst_23 = arith.constant dense<0.000000e+00> : vector<8x128xf32>
    %32 = tpu.matmul %31, %30, %cst_23 {dimension_numbers = #tpu.dot_dimension_numbers<[1], [0], [0], [1], [0, 0, 1, 1], [], []>} : vector<8x128xbf16>, vector<128x128xbf16>, vector<8x128xf32> -> vector<8x128xf32>
    %33 = arith.addf %18, %32 : vector<8x128xf32>
    %c2 = arith.constant 2 : index
    %c0_24 = arith.constant 0 : index
    %c0_25 = arith.constant 0 : index
    %34 = vector.load %arg4[%c2, %c0_24, %c0_25] : memref<3x1x128xf32, #tpu.memory_space<vmem>>, vector<1x1x128xf32>
    %35 = vector.shape_cast %34 : vector<1x1x128xf32> to vector<1x128xf32>
    %36 = vector.broadcast %35 : vector<1x128xf32> to vector<8x128xf32>
    %37 = arith.mulf %33, %36 : vector<8x128xf32>
    %c2_26 = arith.constant 2 : index
    %c0_27 = arith.constant 0 : index
    %c0_28 = arith.constant 0 : index
    %38 = vector.load %arg5[%c2_26, %c0_27, %c0_28] : memref<3x1x128xf32, #tpu.memory_space<vmem>>, vector<1x1x128xf32>
    %39 = vector.shape_cast %38 : vector<1x1x128xf32> to vector<1x128xf32>
    %40 = vector.broadcast %39 : vector<1x128xf32> to vector<8x128xf32>
    %41 = arith.addf %37, %40 : vector<8x128xf32>
    %cst_29 = arith.constant 0.000000e+00 : f32
    %42 = vector.broadcast %cst_29 : f32 to vector<8x128xf32>
    %43 = arith.maximumf %41, %42 : vector<8x128xf32>
    %c0_30 = arith.constant 0 : index
    %c0_31 = arith.constant 0 : index
    %44 = vector.load %arg7[%c0_30, %c0_31] : memref<128x32xbf16, #tpu.memory_space<vmem>>, vector<128x32xbf16>
    %45 = arith.truncf %33 : vector<8x128xf32> to vector<8x128xbf16>
    %cst_32 = arith.constant dense<0.000000e+00> : vector<8x32xf32>
    %46 = tpu.matmul %45, %44, %cst_32 {dimension_numbers = #tpu.dot_dimension_numbers<[1], [0], [0], [1], [0, 0, 1, 1], [], []>} : vector<8x128xbf16>, vector<128x32xbf16>, vector<8x32xf32> -> vector<8x32xf32>
    %c0_33 = arith.constant 0 : index
    %c0_34 = arith.constant 0 : index
    %47 = vector.load %arg6[%c0_33, %c0_34] : memref<128x32xbf16, #tpu.memory_space<vmem>>, vector<128x32xbf16>
    %48 = arith.truncf %43 : vector<8x128xf32> to vector<8x128xbf16>
    %cst_35 = arith.constant dense<0.000000e+00> : vector<8x32xf32>
    %49 = tpu.matmul %48, %47, %cst_35 {dimension_numbers = #tpu.dot_dimension_numbers<[1], [0], [0], [1], [0, 0, 1, 1], [], []>} : vector<8x128xbf16>, vector<128x32xbf16>, vector<8x32xf32> -> vector<8x32xf32>
    %50 = arith.addf %46, %49 : vector<8x32xf32>
    %c0_36 = arith.constant 0 : index
    %c0_37 = arith.constant 0 : index
    %c0_38 = arith.constant 0 : index
    %51 = vector.load %arg9[%c0_36, %c0_37, %c0_38] : memref<3x1x32xf32, #tpu.memory_space<vmem>>, vector<1x1x32xf32>
    %52 = vector.shape_cast %51 : vector<1x1x32xf32> to vector<1x32xf32>
    %53 = vector.broadcast %52 : vector<1x32xf32> to vector<8x32xf32>
    %54 = arith.mulf %50, %53 : vector<8x32xf32>
    %c0_39 = arith.constant 0 : index
    %c0_40 = arith.constant 0 : index
    %c0_41 = arith.constant 0 : index
    %55 = vector.load %arg10[%c0_39, %c0_40, %c0_41] : memref<3x1x32xf32, #tpu.memory_space<vmem>>, vector<1x1x32xf32>
    %56 = vector.shape_cast %55 : vector<1x1x32xf32> to vector<1x32xf32>
    %57 = vector.broadcast %56 : vector<1x32xf32> to vector<8x32xf32>
    %58 = arith.addf %54, %57 : vector<8x32xf32>
    %cst_42 = arith.constant 0.000000e+00 : f32
    %59 = vector.broadcast %cst_42 : f32 to vector<8x32xf32>
    %60 = arith.maximumf %58, %59 : vector<8x32xf32>
    %c0_43 = arith.constant 0 : index
    %c0_44 = arith.constant 0 : index
    %c0_45 = arith.constant 0 : index
    %61 = vector.load %arg8[%c0_43, %c0_44, %c0_45] : memref<2x32x32xbf16, #tpu.memory_space<vmem>>, vector<1x32x32xbf16>
    %62 = vector.shape_cast %61 : vector<1x32x32xbf16> to vector<32x32xbf16>
    %63 = arith.truncf %60 : vector<8x32xf32> to vector<8x32xbf16>
    %cst_46 = arith.constant dense<0.000000e+00> : vector<8x32xf32>
    %64 = tpu.matmul %63, %62, %cst_46 {dimension_numbers = #tpu.dot_dimension_numbers<[1], [0], [0], [1], [0, 0, 1, 1], [], []>} : vector<8x32xbf16>, vector<32x32xbf16>, vector<8x32xf32> -> vector<8x32xf32>
    %65 = arith.addf %50, %64 : vector<8x32xf32>
    %c1_47 = arith.constant 1 : index
    %c0_48 = arith.constant 0 : index
    %c0_49 = arith.constant 0 : index
    %66 = vector.load %arg9[%c1_47, %c0_48, %c0_49] : memref<3x1x32xf32, #tpu.memory_space<vmem>>, vector<1x1x32xf32>
    %67 = vector.shape_cast %66 : vector<1x1x32xf32> to vector<1x32xf32>
    %68 = vector.broadcast %67 : vector<1x32xf32> to vector<8x32xf32>
    %69 = arith.mulf %65, %68 : vector<8x32xf32>
    %c1_50 = arith.constant 1 : index
    %c0_51 = arith.constant 0 : index
    %c0_52 = arith.constant 0 : index
    %70 = vector.load %arg10[%c1_50, %c0_51, %c0_52] : memref<3x1x32xf32, #tpu.memory_space<vmem>>, vector<1x1x32xf32>
    %71 = vector.shape_cast %70 : vector<1x1x32xf32> to vector<1x32xf32>
    %72 = vector.broadcast %71 : vector<1x32xf32> to vector<8x32xf32>
    %73 = arith.addf %69, %72 : vector<8x32xf32>
    %cst_53 = arith.constant 0.000000e+00 : f32
    %74 = vector.broadcast %cst_53 : f32 to vector<8x32xf32>
    %75 = arith.maximumf %73, %74 : vector<8x32xf32>
    %c1_54 = arith.constant 1 : index
    %c0_55 = arith.constant 0 : index
    %c0_56 = arith.constant 0 : index
    %76 = vector.load %arg8[%c1_54, %c0_55, %c0_56] : memref<2x32x32xbf16, #tpu.memory_space<vmem>>, vector<1x32x32xbf16>
    %77 = vector.shape_cast %76 : vector<1x32x32xbf16> to vector<32x32xbf16>
    %78 = arith.truncf %75 : vector<8x32xf32> to vector<8x32xbf16>
    %cst_57 = arith.constant dense<0.000000e+00> : vector<8x32xf32>
    %79 = tpu.matmul %78, %77, %cst_57 {dimension_numbers = #tpu.dot_dimension_numbers<[1], [0], [0], [1], [0, 0, 1, 1], [], []>} : vector<8x32xbf16>, vector<32x32xbf16>, vector<8x32xf32> -> vector<8x32xf32>
    %80 = arith.addf %65, %79 : vector<8x32xf32>
    %c2_58 = arith.constant 2 : index
    %c0_59 = arith.constant 0 : index
    %c0_60 = arith.constant 0 : index
    %81 = vector.load %arg9[%c2_58, %c0_59, %c0_60] : memref<3x1x32xf32, #tpu.memory_space<vmem>>, vector<1x1x32xf32>
    %82 = vector.shape_cast %81 : vector<1x1x32xf32> to vector<1x32xf32>
    %83 = vector.broadcast %82 : vector<1x32xf32> to vector<8x32xf32>
    %84 = arith.mulf %80, %83 : vector<8x32xf32>
    %c2_61 = arith.constant 2 : index
    %c0_62 = arith.constant 0 : index
    %c0_63 = arith.constant 0 : index
    %85 = vector.load %arg10[%c2_61, %c0_62, %c0_63] : memref<3x1x32xf32, #tpu.memory_space<vmem>>, vector<1x1x32xf32>
    %86 = vector.shape_cast %85 : vector<1x1x32xf32> to vector<1x32xf32>
    %87 = vector.broadcast %86 : vector<1x32xf32> to vector<8x32xf32>
    %88 = arith.addf %84, %87 : vector<8x32xf32>
    %cst_64 = arith.constant 0.000000e+00 : f32
    %89 = vector.broadcast %cst_64 : f32 to vector<8x32xf32>
    %90 = arith.maximumf %88, %89 : vector<8x32xf32>
    %c0_65 = arith.constant 0 : index
    %c0_66 = arith.constant 0 : index
    %91 = vector.load %arg12[%c0_65, %c0_66] : memref<32x8xbf16, #tpu.memory_space<vmem>>, vector<32x8xbf16>
    %92 = arith.truncf %80 : vector<8x32xf32> to vector<8x32xbf16>
    %cst_67 = arith.constant dense<0.000000e+00> : vector<8x8xf32>
    %93 = tpu.matmul %92, %91, %cst_67 {dimension_numbers = #tpu.dot_dimension_numbers<[1], [0], [0], [1], [0, 0, 1, 1], [], []>} : vector<8x32xbf16>, vector<32x8xbf16>, vector<8x8xf32> -> vector<8x8xf32>
    %c0_68 = arith.constant 0 : index
    %c0_69 = arith.constant 0 : index
    %94 = vector.load %arg11[%c0_68, %c0_69] : memref<32x8xbf16, #tpu.memory_space<vmem>>, vector<32x8xbf16>
    %95 = arith.truncf %90 : vector<8x32xf32> to vector<8x32xbf16>
    %cst_70 = arith.constant dense<0.000000e+00> : vector<8x8xf32>
    %96 = tpu.matmul %95, %94, %cst_70 {dimension_numbers = #tpu.dot_dimension_numbers<[1], [0], [0], [1], [0, 0, 1, 1], [], []>} : vector<8x32xbf16>, vector<32x8xbf16>, vector<8x8xf32> -> vector<8x8xf32>
    %97 = arith.addf %93, %96 : vector<8x8xf32>
    %c0_71 = arith.constant 0 : index
    %c0_72 = arith.constant 0 : index
    %98 = vector.load %arg13[%c0_71, %c0_72] : memref<8x8xf32, #tpu.memory_space<vmem>>, vector<8x8xf32>
    tpu.vector_store %arg13[%c0_71, %c0_72], %97 {strides = array<i32>} : memref<8x8xf32, #tpu.memory_space<vmem>>, vector<8x8xf32>,
    return
  }
  func.func @transform_0(%arg0: i32) -> (i32, i32) {
    %c0_i32 = arith.constant 0 : i32
    %c0_i32_0 = arith.constant 0 : i32
    return %arg0, %c0_i32 : i32, i32
  }
  func.func @transform_1(%arg0: i32) -> (i32, i32) {
    %c0_i32 = arith.constant 0 : i32
    %c0_i32_0 = arith.constant 0 : i32
    %c0_i32_1 = arith.constant 0 : i32
    return %c0_i32, %c0_i32_0 : i32, i32
  }
  func.func @transform_2(%arg0: i32) -> (i32, i32, i32) {
    %c0_i32 = arith.constant 0 : i32
    %c0_i32_0 = arith.constant 0 : i32
    %c0_i32_1 = arith.constant 0 : i32
    %c0_i32_2 = arith.constant 0 : i32
    return %c0_i32, %c0_i32_0, %c0_i32_1 : i32, i32, i32
  }
  func.func @transform_3(%arg0: i32) -> (i32, i32, i32) {
    %c0_i32 = arith.constant 0 : i32
    %c0_i32_0 = arith.constant 0 : i32
    %c0_i32_1 = arith.constant 0 : i32
    %c0_i32_2 = arith.constant 0 : i32
    return %c0_i32, %c0_i32_0, %c0_i32_1 : i32, i32, i32
  }
  func.func @transform_4(%arg0: i32) -> (i32, i32, i32) {
    %c0_i32 = arith.constant 0 : i32
    %c0_i32_0 = arith.constant 0 : i32
    %c0_i32_1 = arith.constant 0 : i32
    %c0_i32_2 = arith.constant 0 : i32
    return %c0_i32, %c0_i32_0, %c0_i32_1 : i32, i32, i32
  }
  func.func @transform_5(%arg0: i32) -> (i32, i32) {
    %c0_i32 = arith.constant 0 : i32
    %c0_i32_0 = arith.constant 0 : i32
    %c0_i32_1 = arith.constant 0 : i32
    return %c0_i32, %c0_i32_0 : i32, i32
  }
  func.func @transform_6(%arg0: i32) -> (i32, i32) {
    %c0_i32 = arith.constant 0 : i32
    %c0_i32_0 = arith.constant 0 : i32
    %c0_i32_1 = arith.constant 0 : i32
    return %c0_i32, %c0_i32_0 : i32, i32
  }
  func.func @transform_7(%arg0: i32) -> (i32, i32, i32) {
    %c0_i32 = arith.constant 0 : i32
    %c0_i32_0 = arith.constant 0 : i32
    %c0_i32_1 = arith.constant 0 : i32
    %c0_i32_2 = arith.constant 0 : i32
    return %c0_i32, %c0_i32_0, %c0_i32_1 : i32, i32, i32
  }
  func.func @transform_8(%arg0: i32) -> (i32, i32, i32) {
    %c0_i32 = arith.constant 0 : i32
    %c0_i32_0 = arith.constant 0 : i32
    %c0_i32_1 = arith.constant 0 : i32
    %c0_i32_2 = arith.constant 0 : i32
    return %c0_i32, %c0_i32_0, %c0_i32_1 : i32, i32, i32
  }
  func.func @transform_9(%arg0: i32) -> (i32, i32, i32) {
    %c0_i32 = arith.constant 0 : i32
    %c0_i32_0 = arith.constant 0 : i32
    %c0_i32_1 = arith.constant 0 : i32
    %c0_i32_2 = arith.constant 0 : i32
    return %c0_i32, %c0_i32_0, %c0_i32_1 : i32, i32, i32
  }
  func.func @transform_10(%arg0: i32) -> (i32, i32) {
    %c0_i32 = arith.constant 0 : i32
    %c0_i32_0 = arith.constant 0 : i32
    %c0_i32_1 = arith.constant 0 : i32
    return %c0_i32, %c0_i32_0 : i32, i32
  }
  func.func @transform_11(%arg0: i32) -> (i32, i32) {
    %c0_i32 = arith.constant 0 : i32
    %c0_i32_0 = arith.constant 0 : i32
    %c0_i32_1 = arith.constant 0 : i32
    return %c0_i32, %c0_i32_0 : i32, i32
  }
  func.func @transform_12(%arg0: i32) -> (i32, i32) {
    %c0_i32 = arith.constant 0 : i32
    %c0_i32_0 = arith.constant 0 : i32
    return %arg0, %c0_i32 : i32, i32
  }
}

</mosaic_0001>

<bundles_post_ra>
// kernel: representation_forward.1
= control target key start
LH: loop header
LB: loop body
LE: loop exit
PB: predicated region body
PF: predicated region fallthrough
CT: control target
= control target key end

     0   :  { %s2552_s0 = inlined_call_operand.vmem [shape: f32[8,1024], index: 0, kind: input, shape index: {}]   ;;  %s2553_s1 = inlined_call_operand.vmem [shape: bf16[1024,128], index: 1, kind: input, shape index: {}]   ;;  %s2554_s2 = inlined_call_operand.vmem [shape: bf16[2,128,128], index: 2, kind: input, shape index: {}]   ;;  %s2555_s3 = inlined_call_operand.vmem [shape: f32[3,1,128], index: 3, kind: input, shape index: {}]   ;;  %s2556_s4 = inlined_call_operand.vmem [shape: f32[3,1,128], index: 4, kind: input, shape index: {}]   ;;  %s2557_s5 = inlined_call_operand.vmem [shape: bf16[128,32], index: 5, kind: input, shape index: {}]   ;;  %s2558_s6 = inlined_call_operand.vmem [shape: bf16[128,32], index: 6, kind: input, shape index: {}]   ;;  %s2559_s7 = inlined_call_operand.vmem [shape: bf16[2,32,32], index: 7, kind: input, shape index: {}]   ;;  %s2560_s8 = inlined_call_operand.vmem [shape: f32[3,1,32], index: 8, kind: input, shape index: {}]   ;;  %s2561_s9 = inlined_call_operand.vmem [shape: f32[3,1,32], index: 9, kind: input, shape index: {}]   ;;  %s2562_s10 = inlined_call_operand.vmem [shape: bf16[32,8], index: 10, kind: input, shape index: {}]   ;;  %s2563_s11 = inlined_call_operand.vmem [shape: bf16[32,8], index: 11, kind: input, shape index: {}]   ;;  %s2564_s12 = inlined_call_operand.hbm [shape: f32[8,8], index: 12, kind: output, shape index: {}]  }
   0x1   :  { %v1923_v0 = vld [vmem:[%s2553_s1 + $0x78] sm:$0xff]   ;;  %v1927_v4 = vld [vmem:[%s2553_s1 + $0x70] sm:$0xff]   ;;  %v1931_v8 = vld [vmem:[%s2553_s1 + $0x68] sm:$0xff]  }
   0x2   :  { %v1924_v1 = vld [vmem:[%s2553_s1 + $0xf8] sm:$0xff]   ;;  %1672 = vmatprep.subr.bf16.mxu0 %v1923_v0  ;;  %v1928_v5 = vld [vmem:[%s2553_s1 + $0xf0] sm:$0xff]   ;;  %v1932_v9 = vld [vmem:[%s2553_s1 + $0xe8] sm:$0xff]  }
   0x3   :  { %v1925_v2 = vld [vmem:[%s2553_s1 + $0x38] sm:$0xff]   ;;  %1694 = vmatprep.subr.bf16.mxu1 %v1924_v1  ;;  %v1929_v6 = vld [vmem:[%s2553_s1 + $0x30] sm:$0xff]   ;;  %v1933_v10 = vld [vmem:[%s2553_s1 + $0x28] sm:$0xff]  }
   0x4   :  { %v1926_v3 = vld [vmem:[%s2553_s1 + $0xb8] sm:$0xff]   ;;  %1673 = vmatpush3.bf16.msra.mxu0 %v1925_v2  ;;  %v1930_v7 = vld [vmem:[%s2553_s1 + $0xb0] sm:$0xff]   ;;  %v1934_v11 = vld [vmem:[%s2553_s1 + $0xa8] sm:$0xff]  }
   0x5   :  { %1695 = vmatpush3.bf16.msra.mxu1 %v1926_v3  ;;  %1674 = vmatprep.subr.bf16.mxu0 %v1927_v4  ;;  %v1935_v12 = vld [vmem:[%s2553_s1 + $0x60] sm:$0xff]   ;;  %v1939_v16 = vld [vmem:[%s2553_s1 + $0x58] sm:$0xff]   ;;  %v1943_v20 = vld [vmem:[%s2553_s1 + $0x50] sm:$0xff]  }
   0x6   :  { %1696 = vmatprep.subr.bf16.mxu1 %v1928_v5  ;;  %v1936_v13 = vld [vmem:[%s2553_s1 + $0xe0] sm:$0xff]   ;;  %v1940_v17 = vld [vmem:[%s2553_s1 + $0xd8] sm:$0xff]   ;;  %v1944_v21 = vld [vmem:[%s2553_s1 + $0xd0] sm:$0xff]  }
   0x7   :  { %v1937_v14 = vld [vmem:[%s2553_s1 + $0x20] sm:$0xff]   ;;  %v1941_v18 = vld [vmem:[%s2553_s1 + $0x18] sm:$0xff]   ;;  %v1945_v22 = vld [vmem:[%s2553_s1 + $0x10] sm:$0xff]  }
   0x8   :  { %1675 = vmatpush3.bf16.msra.mxu0 %v1929_v6  ;;  %v1938_v15 = vld [vmem:[%s2553_s1 + $0xa0] sm:$0xff]   ;;  %v1942_v19 = vld [vmem:[%s2553_s1 + $0x98] sm:$0xff]   ;;  %v1946_v23 = vld [vmem:[%s2553_s1 + $0x90] sm:$0xff]  }
   0x9   :  { %1697 = vmatpush3.bf16.msra.mxu1 %v1930_v7  ;;  %1676 = vmatprep.subr.bf16.mxu0 %v1931_v8  ;;  %v1947_v24 = vld [vmem:[%s2553_s1 + $0x48] sm:$0xff]   ;;  %v1951_v28 = vld [vmem:[%s2553_s1 + $0x40] sm:$0xff]   ;;  %v46_v33 = vld [vmem:[%s2552_s0 + $0x18] sm:$0xff] }
   0xa   :  { %1698 = vmatprep.subr.bf16.mxu1 %v1932_v9  ;;  %v1948_v25 = vld [vmem:[%s2553_s1 + $0xc8] sm:$0xff]   ;;  %v1952_v29 = vld [vmem:[%s2553_s1 + $0xc0] sm:$0xff]   ;;  %v182_v36 = vpack.c.bf16 %v46_v33, %v46_v33  ;;  %v45_v38 = vld [vmem:[%s2552_s0 + $0x10] sm:$0xff] }
   0xb   :  { %v1949_v26 = vld [vmem:[%s2553_s1 + $0x8] sm:$0xff]   ;;  %v1953_v30 = vld [vmem:[%s2553_s1] sm:$0xff]   ;;  %v181_v39 = vpack.c.bf16 %v45_v38, %v45_v38  ;;  %v1955_v40 = vld [vmem:[%s2553_s1 + $0x178] sm:$0xff]  }
   0xc   :  { %1677 = vmatpush3.bf16.msra.mxu0 %v1933_v10  ;;  %v1950_v27 = vld [vmem:[%s2553_s1 + $0x88] sm:$0xff]   ;;  %v1954_v31 = vld [vmem:[%s2553_s1 + $0x80] sm:$0xff]   ;;  %643 = vmatprep.mubr.bf16.mxu1 %v182_v36  ;;  %v1956_v41 = vld [vmem:[%s2553_s1 + $0x1f8] sm:$0xff]  }
   0xd   :  { %1699 = vmatpush3.bf16.msra.mxu1 %v1934_v11  ;;  %1678 = vmatprep.subr.bf16.mxu0 %v1935_v12  ;;  %v44_v32 = vld [vmem:[%s2552_s0 + $0x8] sm:$0xff]  ;;  %v43_v34 = vld [vmem:[%s2552_s0] sm:$0xff]  ;;  %v1957_v42 = vld [vmem:[%s2553_s1 + $0x138] sm:$0xff]  }
   0xe   :  { %1700 = vmatprep.subr.bf16.mxu1 %v1936_v13  ;;  %v180_v35 = vpack.c.bf16 %v44_v32, %v44_v32  ;;  %v179_v37 = vpack.c.bf16 %v43_v34, %v43_v34  ;;  %v1958_v43 = vld [vmem:[%s2553_s1 + $0x1b8] sm:$0xff]   ;;  %v1959_v44 = vld [vmem:[%s2553_s1 + $0x170] sm:$0xff]   ;;  %v1963_v48 = vld [vmem:[%s2553_s1 + $0x168] sm:$0xff]  }
   0xf   :  { %v1960_v45 = vld [vmem:[%s2553_s1 + $0x1f0] sm:$0xff]   ;;  %v1964_v49 = vld [vmem:[%s2553_s1 + $0x1e8] sm:$0xff]   ;;  %v1967_v52 = vld [vmem:[%s2553_s1 + $0x160] sm:$0xff]  }
  0x10   :  { %1679 = vmatpush3.bf16.msra.mxu0 %v1937_v14  ;;  %603 = vmatprep.mubr.bf16.mxu0 %v180_v35  ;;  %v1961_v46 = vld [vmem:[%s2553_s1 + $0x130] sm:$0xff]   ;;  %v1965_v50 = vld [vmem:[%s2553_s1 + $0x128] sm:$0xff]   ;;  %v1968_v53 = vld [vmem:[%s2553_s1 + $0x1e0] sm:$0xff]  }
  0x11   :  { %1701 = vmatpush3.bf16.msra.mxu1 %v1938_v15  ;;  %1680 = vmatprep.subr.bf16.mxu0 %v1939_v16  ;;  %v1962_v47 = vld [vmem:[%s2553_s1 + $0x1b0] sm:$0xff]   ;;  %v1966_v51 = vld [vmem:[%s2553_s1 + $0x1a8] sm:$0xff]   ;;  %v1969_v54 = vld [vmem:[%s2553_s1 + $0x120] sm:$0xff]  }
  0x12   :  { %1702 = vmatprep.subr.bf16.mxu1 %v1940_v17  ;;  %v1970_v55 = vld [vmem:[%s2553_s1 + $0x1a0] sm:$0xff]   ;;  %v1971_v56 = vld [vmem:[%s2553_s1 + $0x158] sm:$0xff]   ;;  %v1975_v60 = vld [vmem:[%s2553_s1 + $0x150] sm:$0xff]  }
  0x13   :  { %v1972_v57 = vld [vmem:[%s2553_s1 + $0x1d8] sm:$0xff]   ;;  %v1976_v61 = vld [vmem:[%s2553_s1 + $0x1d0] sm:$0xff]   ;;  %v1979_v0 = vld [vmem:[%s2553_s1 + $0x148] sm:$0xff]  }
  0x14   :  { %1681 = vmatpush3.bf16.msra.mxu0 %v1941_v18  ;;  %v1973_v58 = vld [vmem:[%s2553_s1 + $0x118] sm:$0xff]   ;;  %v1977_v62 = vld [vmem:[%s2553_s1 + $0x110] sm:$0xff]   ;;  %v1980_v1 = vld [vmem:[%s2553_s1 + $0x1c8] sm:$0xff]  }
  0x15   :  { %1703 = vmatpush3.bf16.msra.mxu1 %v1942_v19  ;;  %1682 = vmatprep.subr.bf16.mxu0 %v1943_v20  ;;  %v1974_v59 = vld [vmem:[%s2553_s1 + $0x198] sm:$0xff]   ;;  %v1978_v63 = vld [vmem:[%s2553_s1 + $0x190] sm:$0xff]   ;;  %v1981_v2 = vld [vmem:[%s2553_s1 + $0x108] sm:$0xff]  }
  0x16   :  { %1704 = vmatprep.subr.bf16.mxu1 %v1944_v21  ;;  %v1982_v3 = vld [vmem:[%s2553_s1 + $0x188] sm:$0xff]   ;;  %v1983_v4 = vld [vmem:[%s2553_s1 + $0x140] sm:$0xff]   ;;  %v50_v9 = vld [vmem:[%s2552_s0 + $0x38] sm:$0xff] }
  0x17   :  { %v1984_v5 = vld [vmem:[%s2553_s1 + $0x1c0] sm:$0xff]   ;;  %v48_v8 = vld [vmem:[%s2552_s0 + $0x28] sm:$0xff]  ;;  %v186_v11 = vpack.c.bf16 %v50_v9, %v50_v9  ;;  %v49_v13 = vld [vmem:[%s2552_s0 + $0x30] sm:$0xff] }
  0x18   :  { %1683 = vmatpush3.bf16.msra.mxu0 %v1945_v22  ;;  %v1985_v6 = vld [vmem:[%s2553_s1 + $0x100] sm:$0xff]   ;;  %v184_v10 = vpack.c.bf16 %v48_v8, %v48_v8  ;;  %v185_v15 = vpack.c.bf16 %v49_v13, %v49_v13 }
  0x19   :  { %1705 = vmatpush3.bf16.msra.mxu1 %v1946_v23  ;;  %1684 = vmatprep.subr.bf16.mxu0 %v1947_v24  ;;  %v1986_v7 = vld [vmem:[%s2553_s1 + $0x180] sm:$0xff]  }
  0x1a   :  { %1706 = vmatprep.subr.bf16.mxu1 %v1948_v25  ;;  %v47_v12 = vld [vmem:[%s2552_s0 + $0x20] sm:$0xff] }
  0x1b   :  { %v183_v14 = vpack.c.bf16 %v47_v12, %v47_v12 }
  0x1c   :  { %1685 = vmatpush3.bf16.msra.mxu0 %v1949_v26 }
  0x1d   :  { %1707 = vmatpush3.bf16.msra.mxu1 %v1950_v27  ;;  %1686 = vmatprep.subr.bf16.mxu0 %v1951_v28 }
  0x1e   :  { %1708 = vmatprep.subr.bf16.mxu1 %v1952_v29 }
  0x20   :  { %1687 = vmatpush3.bf16.msra.mxu0 %v1953_v30 }
  0x21   :  { %1709 = vmatpush3.bf16.msra.mxu1 %v1954_v31  ;;  %1716 = vmatprep.subr.bf16.mxu0 %v1955_v40 }
  0x22   :  { %1738 = vmatprep.subr.bf16.mxu1 %v1956_v41 }
  0x23   :  { %604 = vmatmul.mubr.bf16.vlgmr.msra.gmra.mxu0 %v179_v37 }
  0x24   :  { %644 = vmatmul.mubr.bf16.vlgmr.msra.gmra.mxu1 %v181_v39  ;;  %1717 = vmatpush3.bf16.msra.mxu0 %v1957_v42 }
  0x25   :  { %1739 = vmatpush3.bf16.msra.mxu1 %v1958_v43  ;;  %1718 = vmatprep.subr.bf16.mxu0 %v1959_v44 }
  0x26   :  { %1740 = vmatprep.subr.bf16.mxu1 %v1960_v45  ;;  %683 = vmatprep.mubr.bf16.mxu0 %v184_v10 }
  0x27   :  { %723 = vmatprep.mubr.bf16.mxu1 %v186_v11 }
  0x28   :  { %1719 = vmatpush3.bf16.msra.mxu0 %v1961_v46 }
  0x29   :  { %1741 = vmatpush3.bf16.msra.mxu1 %v1962_v47  ;;  %1720 = vmatprep.subr.bf16.mxu0 %v1963_v48 }
  0x2a   :  { %1742 = vmatprep.subr.bf16.mxu1 %v1964_v49 }
  0x2c   :  { %1721 = vmatpush3.bf16.msra.mxu0 %v1965_v50 }
  0x2d   :  { %1743 = vmatpush3.bf16.msra.mxu1 %v1966_v51  ;;  %1722 = vmatprep.subr.bf16.mxu0 %v1967_v52 }
  0x2e   :  { %1744 = vmatprep.subr.bf16.mxu1 %v1968_v53 }
  0x30   :  { %1723 = vmatpush3.bf16.msra.mxu0 %v1969_v54 }
  0x31   :  { %1745 = vmatpush3.bf16.msra.mxu1 %v1970_v55  ;;  %1724 = vmatprep.subr.bf16.mxu0 %v1971_v56 }
  0x32   :  { %1746 = vmatprep.subr.bf16.mxu1 %v1972_v57 }
  0x34   :  { %1725 = vmatpush3.bf16.msra.mxu0 %v1973_v58 }
  0x35   :  { %1747 = vmatpush3.bf16.msra.mxu1 %v1974_v59  ;;  %1726 = vmatprep.subr.bf16.mxu0 %v1975_v60 }
  0x36   :  { %1748 = vmatprep.subr.bf16.mxu1 %v1976_v61 }
  0x38   :  { %1727 = vmatpush3.bf16.msra.mxu0 %v1977_v62 }
  0x39   :  { %1749 = vmatpush3.bf16.msra.mxu1 %v1978_v63  ;;  %1728 = vmatprep.subr.bf16.mxu0 %v1979_v0 }
  0x3a   :  { %1750 = vmatprep.subr.bf16.mxu1 %v1980_v1 }
  0x3c   :  { %1729 = vmatpush3.bf16.msra.mxu0 %v1981_v2 }
  0x3d   :  { %1751 = vmatpush3.bf16.msra.mxu1 %v1982_v3  ;;  %1730 = vmatprep.subr.bf16.mxu0 %v1983_v4 }
  0x3e   :  { %1752 = vmatprep.subr.bf16.mxu1 %v1984_v5 }
  0x40   :  { %1731 = vmatpush3.bf16.msra.mxu0 %v1985_v6 }
  0x41   :  { %1753 = vmatpush3.bf16.msra.mxu1 %v1986_v7 }
  0x43   :  { %684 = vmatmul.mubr.bf16.vlgmr.msra.gmra.mxu0 %v183_v14 }
  0x44   :  { %724 = vmatmul.mubr.bf16.vlgmr.msra.gmra.mxu1 %v185_v15 }
  0x45   :  { %17 = vsyncpa [#allocation3], 0  ;;  %v1987_v16 = vld [vmem:[%s2554_s2 + $0x38] sm:$0xff]   ;;  %v2049_v17 = vmov 0.0   ;;  %v1988_v18 = vld [vmem:[%s2554_s2 + $0x30] sm:$0xff]   ;;  %vm2050_vm0 = vmmov 0  }
  0x46   :  { %1808 = vmatprep.subr.bf16.mxu0 %v2049_v17  ;;  %1828 = vmatprep.subr.bf16.mxu1 %v2049_v17  ;;  %v1989_v19 = vld [vmem:[%s2554_s2 + $0x28] sm:$0xff]   ;;  %v1990_v20 = vld [vmem:[%s2554_s2 + $0x20] sm:$0xff]   ;;  %v1991_v21 = vld [vmem:[%s2554_s2 + $0x18] sm:$0xff]   ;;  %vm1243_vm1 = vcmask 261120   ;;  %vm1508_vm2 = vcmask 64512  }
  0x47   :  { %1809 = vmatpush3.bf16.msra.mxu0 %v1987_v16  ;;  %v1992_v22 = vld [vmem:[%s2554_s2 + $0x10] sm:$0xff]   ;;  %v1993_v23 = vld [vmem:[%s2554_s2 + $0x8] sm:$0xff]   ;;  %v1994_v24 = vld [vmem:[%s2554_s2] sm:$0xff]   ;;  %1824 = vmatprep.mubr.msk.bf16.mxu0 %vm2050_vm0, %v2049_v17 }
  0x48   :  { %1810 = vmatprep.subr.bf16.mxu0 %v2049_v17  ;;  %1844 = vmatprep.mubr.msk.bf16.mxu1 %vm2050_vm0, %v2049_v17  ;;  %v1995_v25 = vld [vmem:[%s2554_s2 + $0x78] sm:$0xff]   ;;  %v1996_v26 = vld [vmem:[%s2554_s2 + $0x70] sm:$0xff]   ;;  %v1997_v27 = vld [vmem:[%s2554_s2 + $0x68] sm:$0xff]  }
  0x49   :  { %1829 = vmatpush3.bf16.msra.mxu1 %v1995_v25  ;;  %v1998_v28 = vld [vmem:[%s2554_s2 + $0x60] sm:$0xff]   ;;  %v1999_v29 = vld [vmem:[%s2554_s2 + $0x58] sm:$0xff]   ;;  %v2000_v59 = vld [vmem:[%s2554_s2 + $0x50] sm:$0xff]  }
  0x4a   :  { %1830 = vmatprep.subr.bf16.mxu1 %v2049_v17  ;;  %v1588_v50 = vld [vmem:[%s2555_s3] ss:$0 sm:$0xff]  ;;  %v2001_v60 = vld [vmem:[%s2554_s2 + $0x48] sm:$0xff]   ;;  %v2005_v62 = vld [vmem:[%s2557_s5 + $0x38] sm:$0xff]  }
  0x4b   :  { %1811 = vmatpush3.bf16.msra.mxu0 %v1988_v18  ;;  %v1589_v54 = vld [vmem:[%s2556_s4] ss:$0 sm:$0xff]  ;;  %v2007_v63 = vld [vmem:[%s2557_s5 + $0x30] sm:$0xff]   ;;  %v2009_v0 = vld [vmem:[%s2557_s5 + $0x28] sm:$0xff]  }
  0x4c   :  { %1812 = vmatprep.subr.bf16.mxu0 %v2049_v17  ;;  %v2002_v61 = vld [vmem:[%s2554_s2 + $0x40] sm:$0xff]   ;;  %v2013_v2 = vld [vmem:[%s2557_s5 + $0x18] sm:$0xff]   ;;  %v2004_v15 = vld [vmem:[%s2558_s6 + $0x30] sm:$0xff]  }
  0x4d   :  { %1831 = vmatpush3.bf16.msra.mxu1 %v1996_v26  ;;  %v2011_v1 = vld [vmem:[%s2557_s5 + $0x20] sm:$0xff]   ;;  %v2003_v13 = vld [vmem:[%s2558_s6 + $0x38] sm:$0xff]   ;;  %v2006_v16 = vld [vmem:[%s2558_s6 + $0x28] sm:$0xff]  }
  0x4e   :  { %1832 = vmatprep.subr.bf16.mxu1 %v2049_v17  ;;  %v1599_v4 = vld [vmem:[%s2555_s3 + $0x1] ss:$0 sm:$0xff] }
  0x4f   :  { %1813 = vmatpush3.bf16.msra.mxu0 %v1989_v19  ;;  %v1601_v6 = vld [vmem:[%s2556_s4 + $0x1] ss:$0 sm:$0xff]  ;;  %v2010_v19 = vld [vmem:[%s2558_s6 + $0x18] sm:$0xff]  }
  0x50   :  { %1814 = vmatprep.subr.bf16.mxu0 %v2049_v17  ;;  %v2008_v18 = vld [vmem:[%s2558_s6 + $0x20] sm:$0xff]  }
  0x51   :  { %1833 = vmatpush3.bf16.msra.mxu1 %v1997_v27  ;;  %v2018_v25 = vld [vmem:[%s2557_s5] sm:$0xff]  }
  0x52   :  { %1834 = vmatprep.subr.bf16.mxu1 %v2049_v17  ;;  %v1627_v27 = vld [vmem:[%s2555_s3 + $0x2] ss:$0 sm:$0xff] }
  0x53   :  { %1815 = vmatpush3.bf16.msra.mxu0 %v1990_v20  ;;  %v2012_v20 = vld [vmem:[%s2558_s6 + $0x10] sm:$0xff]  }
  0x54   :  { %1816 = vmatprep.subr.bf16.mxu0 %v2049_v17 }
  0x55   :  { %1835 = vmatpush3.bf16.msra.mxu1 %v1998_v28 }
  0x56   :  { %1836 = vmatprep.subr.bf16.mxu1 %v2049_v17 }
  0x57   :  { %1817 = vmatpush3.bf16.msra.mxu0 %v1991_v21  ;;  %v2014_v21 = vld [vmem:[%s2558_s6 + $0x8] sm:$0xff]  }
  0x58   :  { %1818 = vmatprep.subr.bf16.mxu0 %v2049_v17 }
  0x59   :  { %1837 = vmatpush3.bf16.msra.mxu1 %v1999_v29  ;;  %v1629_v29 = vld [vmem:[%s2556_s4 + $0x2] ss:$0 sm:$0xff] }
  0x5a   :  { %1838 = vmatprep.subr.bf16.mxu1 %v2049_v17 }
  0x5b   :  { %1819 = vmatpush3.bf16.msra.mxu0 %v1992_v22  ;;  %v2015_v22 = vld [vmem:[%s2557_s5 + $0x10] sm:$0xff]  }
  0x5c   :  { %1820 = vmatprep.subr.bf16.mxu0 %v2049_v17 }
  0x5d   :  { %1839 = vmatpush3.bf16.msra.mxu1 %v2000_v59 }
  0x5e   :  { %1840 = vmatprep.subr.bf16.mxu1 %v2049_v17 }
  0x5f   :  { %1821 = vmatpush3.bf16.msra.mxu0 %v1993_v23  ;;  %v2016_v23 = vld [vmem:[%s2558_s6] sm:$0xff]  }
  0x60   :  { %1822 = vmatprep.subr.bf16.mxu0 %v2049_v17 }
  0x61   :  { %1841 = vmatpush3.bf16.msra.mxu1 %v2001_v60  ;;  %v1654_v60 = vld [vmem:[%s2561_s9 + $0x1] ss:$0 sm:$0xff] }
  0x62   :  { %1842 = vmatprep.subr.bf16.mxu1 %v2049_v17 }
  0x63   :  { %1823 = vmatpush3.bf16.msra.mxu0 %v1994_v24  ;;  %v2017_v24 = vld [vmem:[%s2557_s5 + $0x8] sm:$0xff]  }
  0x64   :  { %1848 = vmatprep.subr.bf16.mxu0 %v2049_v17 }
  0x65   :  { %1843 = vmatpush3.bf16.msra.mxu1 %v2002_v61 }
  0x66   :  { %1868 = vmatprep.subr.bf16.mxu1 %v2049_v17 }
  0xe3   :  { %v1688_v30 = vpop.f32.mrf.mxu0 }
  0xe4   :  { %v1710_v31 = vpop.f32.mrf.mxu1 }
  0xe5   :  { %v1689_v32 = vpop.f32.mrf.mxu0 }
  0xe6   :  { %v1711_v33 = vpop.f32.mrf.mxu1  ;;  %v1690_v38 = vadd.f32 %v1689_v32, %v1688_v30 }
  0xe7   :  { %v1691_v34 = vpop.f32.mrf.mxu0  ;;  %v1712_v39 = vadd.f32 %v1711_v33, %v1710_v31 }
  0xe8   :  { %v1713_v35 = vpop.f32.mrf.mxu1 }
  0xe9   :  { %v1692_v36 = vpop.f32.mrf.mxu0  ;;  %v646_v43 = vadd.f32 %v1712_v39, %v1690_v38  ;;  %v2019_v38 = vld [vmem:[%s2559_s7 + $0x8] sm:$0xff]   ;;  %v2020_v39 = vld [vmem:[%s2559_s7] sm:$0xff]  }
  0xea   :  { %v1714_v37 = vpop.f32.mrf.mxu1 }
 0x103   :  { %v1732_v40 = vpop.f32.mrf.mxu0 }
 0x104   :  { %v1754_v41 = vpop.f32.mrf.mxu1 }
 0x105   :  { %v1733_v42 = vpop.f32.mrf.mxu0 }
 0x106   :  { %v1734_v44 = vadd.f32 %v1733_v42, %v1732_v40  ;;  %v1755_v45 = vpop.f32.mrf.mxu1 }
 0x107   :  { %v1735_v46 = vpop.f32.mrf.mxu0  ;;  %v1756_v48 = vadd.f32 %v1755_v45, %v1754_v41 }
 0x108   :  { %v686_v47 = vadd.f32 %v1734_v44, %v646_v43  ;;  %v1757_v49 = vpop.f32.mrf.mxu1  ;;  %v1646_v44 = vld [vmem:[%s2560_s8] ss:$0 sm:$0xff] }
 0x109   :  { %v1736_v51 = vpop.f32.mrf.mxu0 }
 0x10a   :  { %v726_v52 = vadd.f32 %v1756_v48, %v686_v47  ;;  %v1758_v53 = vpop.f32.mrf.mxu1  ;;  %v1647_v47 = vld [vmem:[%s2561_s9] ss:$0 sm:$0xff] }
 0x10c   :  { %v738_v55 = vmul.f32 %v1588_v50, %v726_v52 }
 0x10e   :  { %v746_v56 = vadd.f32 %v1589_v54, %v738_v55  ;;  %v2021_v55 = vld [vmem:[%s2559_s7 + $0x18] sm:$0xff]  }
 0x110   :  { %v747_v57 = vmax.f32 %v746_v56, 0.0  ;;  %v2022_v56 = vld [vmem:[%s2559_s7 + $0x10] sm:$0xff]  }
 0x112   :  { %v764_v58 = vpack.c.bf16 %v747_v57, %v747_v57 }
 0x114   :  { %1825 = vmatmul.mubr.bf16.vlgmr.msra.gmra.mxu0 %v764_v58  ;;  %v1652_v58 = vld [vmem:[%s2560_s8 + $0x1] ss:$0 sm:$0xff] }
 0x115   :  { %1864 = vmatprep.mubr.msk.bf16.mxu0 %vm2050_vm0, %v2049_v17  ;;  %1849 = vmatpush3.bf16.msra.mxu0 %v2005_v62 }
 0x116   :  { %1850 = vmatprep.subr.bf16.mxu0 %v2049_v17 }
 0x119   :  { %1851 = vmatpush3.bf16.msra.mxu0 %v2007_v63 }
 0x11a   :  { %1852 = vmatprep.subr.bf16.mxu0 %v2049_v17 }
 0x11d   :  { %1853 = vmatpush3.bf16.msra.mxu0 %v2009_v0 }
 0x11e   :  { %1854 = vmatprep.subr.bf16.mxu0 %v2049_v17 }
 0x121   :  { %1855 = vmatpush3.bf16.msra.mxu0 %v2011_v1 }
 0x122   :  { %1856 = vmatprep.subr.bf16.mxu0 %v2049_v17 }
 0x125   :  { %1857 = vmatpush3.bf16.msra.mxu0 %v2013_v2 }
 0x126   :  { %1858 = vmatprep.subr.bf16.mxu0 %v2049_v17 }
 0x129   :  { %1859 = vmatpush3.bf16.msra.mxu0 %v2015_v22 }
 0x12a   :  { %1860 = vmatprep.subr.bf16.mxu0 %v2049_v17 }
 0x12d   :  { %1861 = vmatpush3.bf16.msra.mxu0 %v2017_v24 }
 0x12e   :  { %1862 = vmatprep.subr.bf16.mxu0 %v2049_v17 }
 0x131   :  { %1863 = vmatpush3.bf16.msra.mxu0 %v2018_v25 }
 0x132   :  { %1888 = vmatprep.subr.bf16.mxu0 %v2049_v17 }
 0x1d4   :  { %v847_v3 = vpop.f32.mrf.mxu0 }
 0x1d5   :  { %v853_v5 = vadd.f32 %v847_v3, %v726_v52  ;;  %v2023_v3 = vld [vmem:[%s2563_s11 + $0x8] sm:$0xff]  }
 0x1d6   :  { %v1826_v7 = vpop.f32.mrf.mxu0 }
 0x1d7   :  { %v862_v8 = vmul.f32 %v1599_v4, %v853_v5  ;;  %v2026_v7 = vld [vmem:[%s2562_s10] sm:$0xff]  }
 0x1d8   :  { %v850_v9 = vpop.f32.mrf.mxu0 }
 0x1d9   :  { %v871_v10 = vadd.f32 %v1601_v6, %v862_v8  ;;  %v2025_v6 = vld [vmem:[%s2562_s10 + $0x8] sm:$0xff]   ;;  %v1663_v9 = vld [vmem:[%s2560_s8 + $0x2] ss:$0 sm:$0xff]  ;;  %s2051_s8 = smov [#allocation2]  }
 0x1da   :  { %v1827_v11 = vpop.f32.mrf.mxu0  ;;  %s1516_s10 = sshll.u32 %s2051_s8, 4  ;;  %s1517_s10 = int_to_ptr.vmem [resolvable:$true] %s1516_s10 }
 0x1db   :  { %v872_v12 = vmax.f32 %v871_v10, 0.0  ;;  %v1665_v11 = vld [vmem:[%s2561_s9 + $0x2] ss:$0 sm:$0xff]  ;;  %s2027_s9 = scalar_lea.vmem %s1517_s10, 128  ;;  %p2032_p1 = scmp.lt.s32.totalorder %s1517_s10, %s1517_s10 }
 0x1dc   :  { %p2028_p0 = scmp.ne.s32.totalorder %s1517_s10, %s2027_s9  ;;  %p2033_p2 = scmp.lt.s32.totalorder %s2027_s9, %s2027_s9 }
 0x1dd   :  { %v890_v14 = vpack.c.bf16 %v872_v12, %v872_v12 }
 0x1de   :  { %p2034_p3 = por %p2033_p2, %p2032_p1 }
 0x1df   :  { %1845 = vmatmul.mubr.bf16.vlgmr.msra.gmra.mxu1 %v890_v14 }
 0x1e0   :  { %1869 = vmatpush3.bf16.msra.mxu1 %v2003_v13  ;;  %1884 = vmatprep.mubr.msk.bf16.mxu1 %vm2050_vm0, %v2049_v17  ;;  %p2035_p4 = pnand %p2034_p3, %p2028_p0 }
 0x1e1   :  { %1870 = vmatprep.subr.bf16.mxu1 %v2049_v17 }
 0x1e4   :  { %1871 = vmatpush3.bf16.msra.mxu1 %v2004_v15 }
 0x1e5   :  { %1872 = vmatprep.subr.bf16.mxu1 %v2049_v17 }
 0x1e8   :  { %1873 = vmatpush3.bf16.msra.mxu1 %v2006_v16 }
 0x1e9   :  { %1874 = vmatprep.subr.bf16.mxu1 %v2049_v17 }
 0x1ec   :  { %1875 = vmatpush3.bf16.msra.mxu1 %v2008_v18 }
 0x1ed   :  { %1876 = vmatprep.subr.bf16.mxu1 %v2049_v17 }
 0x1f0   :  { %1877 = vmatpush3.bf16.msra.mxu1 %v2010_v19 }
 0x1f1   :  { %1878 = vmatprep.subr.bf16.mxu1 %v2049_v17 }
 0x1f4   :  { %1879 = vmatpush3.bf16.msra.mxu1 %v2012_v20 }
 0x1f5   :  { %1880 = vmatprep.subr.bf16.mxu1 %v2049_v17 }
 0x1f8   :  { %1881 = vmatpush3.bf16.msra.mxu1 %v2014_v21 }
 0x1f9   :  { %1882 = vmatprep.subr.bf16.mxu1 %v2049_v17 }
 0x1fc   :  { %1883 = vmatpush3.bf16.msra.mxu1 %v2016_v23 }
 0x1fd   :  { %1896 = vmatprep.subr.bf16.mxu1 %v2049_v17 }
 0x29f   :  { %v973_v26 = vpop.f32.mrf.mxu1 }
 0x2a0   :  { %v979_v28 = vadd.f32 %v973_v26, %v853_v5  ;;  %v2024_v5 = vld [vmem:[%s2563_s11] sm:$0xff]  }
 0x2a1   :  { %v1846_v30 = vpop.f32.mrf.mxu1 }
 0x2a2   :  { %v988_v31 = vmul.f32 %v1627_v27, %v979_v28  ;;  %v1015_v32 = vpack.c.bf16 %v979_v28, %v979_v28 }
 0x2a3   :  { %v976_v33 = vpop.f32.mrf.mxu1 }
 0x2a4   :  { %v997_v34 = vadd.f32 %v1629_v29, %v988_v31  ;;  %1885 = vmatmul.mubr.bf16.vlgmr.msra.gmra.mxu1 %v1015_v32 }
 0x2a5   :  { %v1847_v35 = vpop.f32.mrf.mxu1  ;;  %1900 = vmatprep.mubr.msk.bf16.mxu1 %vm2050_vm0, %v2049_v17  ;;  %1897 = vmatpush3.bf16.msra.mxu1 %v2021_v55 }
 0x2a6   :  { %v998_v36 = vmax.f32 %v997_v34, 0.0  ;;  %1898 = vmatprep.subr.bf16.mxu1 %v2049_v17 }
 0x2a8   :  { %v1032_v37 = vpack.c.bf16 %v998_v36, %v998_v36 }
 0x2a9   :  { %1899 = vmatpush3.bf16.msra.mxu1 %v2022_v56 }
 0x2aa   :  { %1865 = vmatmul.mubr.bf16.vlgmr.msra.gmra.mxu0 %v1032_v37  ;;  %1912 = vmatprep.subr.bf16.mxu1 %v2049_v17 }
 0x2ab   :  { %1892 = vmatprep.mubr.msk.bf16.mxu0 %vm2050_vm0, %v2049_v17  ;;  %1889 = vmatpush3.bf16.msra.mxu0 %v2019_v38 }
 0x2ac   :  { %1890 = vmatprep.subr.bf16.mxu0 %v2049_v17 }
 0x2af   :  { %1891 = vmatpush3.bf16.msra.mxu0 %v2020_v39 }
 0x2b0   :  { %1904 = vmatprep.subr.bf16.mxu0 %v2049_v17 }
 0x364   :  { %v1203_v40 = vpop.f32.mrf.mxu1 }
 0x366   :  { %v1886_v41 = vpop.f32.mrf.mxu1 }
 0x368   :  { %v1206_v42 = vpop.f32.mrf.mxu1 }
 0x36a   :  { %v1115_v43 = vpop.f32.mrf.mxu0  ;;  %v1887_v45 = vpop.f32.mrf.mxu1 }
 0x36b   :  { %v1204_v46 = vadd.f32 %v1203_v40, %v1115_v43 }
 0x36c   :  { %v1866_v48 = vpop.f32.mrf.mxu0 }
 0x36d   :  { %v1216_v49 = vmul.f32 %v1646_v44, %v1204_v46 }
 0x36e   :  { %v1118_v50 = vpop.f32.mrf.mxu0 }
 0x36f   :  { %v1224_v51 = vadd.f32 %v1647_v47, %v1216_v49 }
 0x370   :  { %v1867_v52 = vpop.f32.mrf.mxu0 }
 0x371   :  { %v1225_v53 = vmax.f32 %v1224_v51, 0.0 }
 0x373   :  { %v1230_v54 = vpack.c.bf16 %v1225_v53, %v1225_v53 }
 0x375   :  { %1893 = vmatmul.mubr.msk.bf16.vlgmr.msra.gmra.mxu0 %vm1243_vm1, %v1230_v54 }
 0x376   :  { %1908 = vmatprep.mubr.msk.bf16.mxu0 %vm2050_vm0, %v2049_v17  ;;  %1905 = vmatpush3.bf16.msra.mxu0 %v2025_v6 }
 0x377   :  { %1906 = vmatprep.subr.bf16.mxu0 %v2049_v17 }
 0x37a   :  { %1907 = vmatpush3.bf16.msra.mxu0 %v2026_v7 }
 0x435   :  { %v1281_v57 = vpop.f32.mrf.mxu0 }
 0x436   :  { %v1287_v59 = vadd.f32 %v1281_v57, %v1204_v46 }
 0x437   :  { %v1894_v61 = vpop.f32.mrf.mxu0 }
 0x438   :  { %v1296_v62 = vmul.f32 %v1652_v58, %v1287_v59 }
 0x439   :  { %v1284_v63 = vpop.f32.mrf.mxu0 }
 0x43a   :  { %v1305_v0 = vadd.f32 %v1654_v60, %v1296_v62 }
 0x43b   :  { %v1895_v1 = vpop.f32.mrf.mxu0 }
 0x43c   :  { %v1306_v2 = vmax.f32 %v1305_v0, 0.0 }
 0x43e   :  { %v1312_v4 = vpack.c.bf16 %v1306_v2, %v1306_v2 }
 0x440   :  { %1901 = vmatmul.mubr.msk.bf16.vlgmr.msra.gmra.mxu1 %vm1243_vm1, %v1312_v4 }
 0x441   :  { %1913 = vmatpush3.bf16.msra.mxu1 %v2023_v3  ;;  %1916 = vmatprep.mubr.msk.bf16.mxu1 %vm2050_vm0, %v2049_v17 }
 0x442   :  { %1914 = vmatprep.subr.bf16.mxu1 %v2049_v17 }
 0x445   :  { %1915 = vmatpush3.bf16.msra.mxu1 %v2024_v5 }
 0x500   :  { %v1362_v8 = vpop.f32.mrf.mxu1 }
 0x501   :  { %v1368_v10 = vadd.f32 %v1362_v8, %v1287_v59 }
 0x502   :  { %v1902_v12 = vpop.f32.mrf.mxu1 }
 0x503   :  { %v1377_v13 = vmul.f32 %v1663_v9, %v1368_v10  ;;  %v1392_v14 = vpack.c.bf16 %v1368_v10, %v1368_v10 }
 0x504   :  { %v1365_v15 = vpop.f32.mrf.mxu1 }
 0x505   :  { %v1386_v17 = vadd.f32 %v1665_v11, %v1377_v13  ;;  %1917 = vmatmul.mubr.msk.bf16.vlgmr.msra.gmra.mxu1 %vm1243_vm1, %v1392_v14 }
 0x506   :  { %v1903_v16 = vpop.f32.mrf.mxu1 }
 0x507   :  { %v1387_v18 = vmax.f32 %v1386_v17, 0.0 }
 0x509   :  { %v1397_v19 = vpack.c.bf16 %v1387_v18, %v1387_v18 }
 0x50b   :  { %1909 = vmatmul.mubr.msk.bf16.vlgmr.msra.gmra.mxu0 %vm1243_vm1, %v1397_v19 }
 0x5c5   :  { %v1502_v20 = vpop.f32.mrf.mxu1 }
 0x5c7   :  { %v1918_v21 = vpop.f32.mrf.mxu1 }
 0x5c9   :  { %v1505_v22 = vpop.f32.mrf.mxu1 }
 0x5cb   :  { %v1447_v23 = vpop.f32.mrf.mxu0  ;;  %v1919_v24 = vpop.f32.mrf.mxu1 }
 0x5cc   :  { %v1503_v25 = vadd.f32 %v1502_v20, %v1447_v23 }
 0x5cd   :  { %v1910_v26 = vpop.f32.mrf.mxu0 }
 0x5ce   :  { %1509 = vst.msk [vmem:[#allocation2] sm:$0xff] %vm1508_vm2, %v1503_v25 }
 0x5cf   :  { %v1450_v27 = vpop.f32.mrf.mxu0 }
 0x5d0   :  { %2038 = shalt.err (!%p2035_p4)
}
 0x5d1   :  { %1519 = dma.vmem_to_hbm [thread:$0]  %s1517_s10, 128, %s2564_s12, [#allocation3]   ;;  %v1911_v28 = vpop.f32.mrf.mxu0 }
 0x5d2   :  { %2047 = dma.done.wait [#allocation3], 128  }
 0x5d3   :  { %2048 = vsyncadd [#allocation3], 4294967168 }
 0x5d4   :  { %1523 = vsyncpa [#allocation3], 1 }

</bundles_post_ra>
